<compile_context>
chip_gen: v7x
topology: tpu7x:2x2x1
jax: 0.10.0
libtpu: 0.0.40
codegen_flags: <defaults>
</compile_context>

<pallas_src>
import math

import numpy as np
import jax
import jax.numpy as jnp
from jax.experimental import pallas as pl
from jax.experimental.pallas import tpu as pltpu


# --------------------------------------------------------------------------- kernel


def _make_group_kernel(g, d, s_sel, block_rows, scale):
    """Kernel over one (block_rows, g*d) tile.

    Each row is one (batch, segment, dilated position); attention runs over the
    tiny g (heads-per-group) axis with a d-wide dot.  Also writes per-block
    partial sums of the output (for the reference's x / x.sum((1, 2)) step).
    """

    def kernel(q_ref, k_ref, v_ref, o_ref, sums_ref):
        si = pl.program_id(1)
        # Row validity for a ragged last row-block: only the normalisation sums
        # need masking (out-of-bounds output-row stores are dropped by Pallas).
        row = si * block_rows + jax.lax.broadcasted_iota(
            jnp.int32, (block_rows, 1), 0)
        valid = row < s_sel

        for i in range(g):                                    # g is tiny & static
            qi = q_ref[:, i * d:(i + 1) * d].astype(jnp.float32)      # (TM, d)
            # Scores for head i are produced and consumed here (live set O(g)).
            s_list = []
            for j in range(g):
                kj = k_ref[:, j * d:(j + 1) * d].astype(jnp.float32)
                s_list.append(jnp.sum(qi * kj, axis=1, keepdims=True) * scale)
            m = s_list[0]
            for sj in s_list[1:]:
                m = jnp.maximum(m, sj)
            p_list = [jnp.exp(sj - m) for sj in s_list]                # EUP
            denom = p_list[0]
            for pj in p_list[1:]:
                denom = denom + pj
            inv = pl.reciprocal(denom, approx=False)   # exact: EUP has huge slack
            acc = p_list[0] * v_ref[:, 0:d].astype(jnp.float32)
            for j in range(1, g):
                acc = acc + p_list[j] * v_ref[:, j * d:(j + 1) * d].astype(jnp.float32)
            out_i = acc * inv                                          # (TM, d)

            # Direct per-head, lane-dense stores (no jnp.stack temporary).
            o_ref[:, i * d:(i + 1) * d] = out_i.astype(o_ref.dtype)
            sums_ref[:, i * d:(i + 1) * d] = jnp.sum(
                jnp.where(valid, out_i, 0.0), axis=0, keepdims=True)

    return kernel


# ---------------------------------------------------------------- per-group wrappers


def _dilated_group_attention_pallas(query, key, value, *, n_seg, s_sel, r,
                                    offset, hmin, g, block_rows=None):
    """One dilation group with the gather fused into the kernel's DMA.

    Reads the original (b, n, h, d) arrays (only free row-major reshapes).
    Returns x: (b, n_seg, s_sel, g, d) in the input dtype and
            sums = x.sum(axis=(1, 2)): (b, g, d) in f32.
    """
    b, n, h, d = query.shape
    BN, gd = b * n_seg, g * d
    scale = 1.0 / math.sqrt(d)
    itemsize = query.dtype.itemsize

    # Free reshapes (never materialised): the offset::r select and the head slice
    # become a single aligned BlockSpec window on the folded (r*h*d) axis.
    qv = query.reshape(BN, s_sel, r * h * d)
    kv = key.reshape(BN, s_sel, r * h * d)
    vv = value.reshape(BN, s_sel, r * h * d)
    lane_block = (offset * h * d + hmin * d) // gd   # alignment checked by caller

    if block_rows is None:
        # 3 inputs + 1 output, double-buffered; keep the pipelined footprint around
        # 12 MiB so it fits every generation (v5e 16 MiB scoped, v7x 64 MiB VMEM).
        block_rows = max(8, (12 << 20) // (gd * itemsize * 4 * 2))
    if block_rows >= s_sel:
        block_rows = s_sel                     # full-dim block is always legal
    else:
        block_rows = max(8, (block_rows // 8) * 8)
    num_sblocks = pl.cdiv(s_sel, block_rows)

    pipeline_bytes = 4 * 2 * block_rows * gd * itemsize + 2 * block_rows * gd * 4
    vmem_bytes = int(min(32 << 20, max(8 << 20, 2 * pipeline_bytes)))

    io_spec = pl.BlockSpec((None, block_rows, gd),
                           lambda bn, si: (bn, si, lane_block))
    out_spec = pl.BlockSpec((None, block_rows, gd), lambda bn, si: (bn, si, 0))
    sums_spec = pl.BlockSpec((None, 1, gd), lambda bn, si: (bn, si, 0))

    x, partial = pl.pallas_call(
        _make_group_kernel(g, d, s_sel, block_rows, scale),
        grid=(BN, num_sblocks),                 # both axes parallel (v7x megacore)
        in_specs=[io_spec, io_spec, io_spec],
        out_specs=[out_spec, sums_spec],
        out_shape=[jax.ShapeDtypeStruct((BN, s_sel, gd), query.dtype),
                   jax.ShapeDtypeStruct((BN, num_sblocks, gd), jnp.float32)],
        compiler_params=pltpu.CompilerParams(
            dimension_semantics=("parallel", "parallel"),
            vmem_limit_bytes=vmem_bytes),
        cost_estimate=pl.CostEstimate(
            flops=4 * BN * s_sel * g * g * d,
            transcendentals=BN * s_sel * g * g,
            bytes_accessed=(3 + 1) * BN * s_sel * gd * itemsize),
    )(qv, kv, vv)

    x = x.reshape(b, n_seg, s_sel, g, d)
    sums = partial.reshape(b, n_seg * num_sblocks, g, d).sum(axis=1)   # (b, g, d)
    return x, sums


def _dilated_group_attention_xla(query, key, value, *, n_seg, s, r, offset,
                                 hmin, hmax):
    """Plain-XLA group attention (fallback for gathers the fused path can't express)."""
    b, n, h, d = query.shape
    q5 = query.reshape(b, n_seg, s, h, d)[:, :, offset::r, hmin:hmax, :].astype(jnp.float32)
    k5 = key.reshape(b, n_seg, s, h, d)[:, :, offset::r, hmin:hmax, :].astype(jnp.float32)
    v5 = value.reshape(b, n_seg, s, h, d)[:, :, offset::r, hmin:hmax, :].astype(jnp.float32)
    logits = jnp.einsum("bnsld,bnsmd->bnslm", q5, k5) / math.sqrt(d)
    x = jnp.einsum("bnslm,bnsmd->bnsld", jax.nn.softmax(logits, axis=-1), v5)
    return x.astype(query.dtype), jnp.sum(x, axis=(1, 2))


# --------------------------------------------------------------- DilatedAttention fwd


def dilated_attention(query, key, value, segment_lengths, dilation_rates,
                      use_pallas=True):
    """Forward pass of the PyTorch DilatedAttention module (no learned params)."""
    if len(segment_lengths) != len(dilation_rates):
        raise ValueError("segment_lengths and dilation_rates must have the same length")
    b, n, h, d = query.shape
    num_groups = len(dilation_rates)
    group_sizes = [h // num_groups] * num_groups
    for i in range(h % num_groups):
        group_sizes[i] += 1

    out = jnp.zeros_like(query)
    for i, (g, r, s) in enumerate(zip(group_sizes, dilation_rates, segment_lengths)):
        n_seg = n // s
        offset = i % r
        hmin, hmax = i * g, (i + 1) * g

        fused_ok = (use_pallas
                    and s % r == 0                                    # offset::r == (s//r, r) view
                    and (g * d) % 128 == 0                            # lane-dense tiles
                    and (offset * h * d + hmin * d) % (g * d) == 0)   # aligned window
        if fused_ok:
            x, sums = _dilated_group_attention_pallas(
                query, key, value, n_seg=n_seg, s_sel=s // r, r=r,
                offset=offset, hmin=hmin, g=g)
        else:
            # TODO(synk): gathers that are not an aligned BlockSpec window (s % r != 0,
            # g*d not a multiple of 128, unaligned head offset) fall back to plain XLA.
            x, sums = _dilated_group_attention_xla(
                query, key, value, n_seg=n_seg, s=s, r=r,
                offset=offset, hmin=hmin, hmax=hmax)

        # x / x.sum((1, 2)) with the final /num_groups folded in; the sums come from
        # the kernel, so this is one elementwise pass instead of reduce+divide+divide.
        xn = x / (sums[:, None, None, :, :] * num_groups)
        # TODO(synk): the strided scatter-add back into the (b, n, h, d) output stays in XLA.
        out5 = out.reshape(b, n_seg, s, h, d)
        out5 = out5.at[:, :, offset::r, hmin:hmax, :].add(xn.astype(out.dtype))
        out = out5.reshape(b, n, h, d)
    return out


def dilated_attention_reference(query, key, value, segment_lengths, dilation_rates):
    """Direct jnp transliteration of the PyTorch forward (independent of the Pallas
    wrapper); validates attention, normalisation, scatter-add and /num_groups."""
    b, n, h, d = query.shape
    num_groups = len(dilation_rates)
    group_sizes = [h // num_groups] * num_groups
    for i in range(h % num_groups):
        group_sizes[i] += 1
    out = jnp.zeros_like(query)
    for i, (g, r, s) in enumerate(zip(group_sizes, dilation_rates, segment_lengths)):
        n_seg = n // s
        offset = i % r
        hmin, hmax = i * g, (i + 1) * g
        q5 = query.reshape(b, n_seg, s, h, d)[:, :, offset::r, hmin:hmax, :]
        k5 = key.reshape(b, n_seg, s, h, d)[:, :, offset::r, hmin:hmax, :]
        v5 = value.reshape(b, n_seg, s, h, d)[:, :, offset::r, hmin:hmax, :]
        logits = jnp.einsum("bnsld,bnsmd->bnslm", q5, k5) / math.sqrt(d)
        x = jnp.einsum("bnslm,bnsmd->bnsld", jax.nn.softmax(logits, axis=-1), v5)
        x = x / jnp.sum(x, axis=(1, 2), keepdims=True)
        out5 = out.reshape(b, n_seg, s, h, d)
        out5 = out5.at[:, :, offset::r, hmin:hmax, :].add(x)
        out = out5.reshape(b, n, h, d)
    return out / num_groups


# ---------------------------------------------------------------------------- main


if __name__ == "__main__":
    rng = jax.random.PRNGKey(0)
    kq, kk, kv = jax.random.split(rng, 3)

    # Small shapes consistent with the module: (b, n, h, d) with n divisible by every
    # segment length; d=128 (a standard head dim) keeps the g*d windows lane-aligned.
    b, n, h, d = 2, 8, 4, 128
    segment_lengths = (4, 8)
    dilation_rates = (1, 2)

    query = jax.random.normal(kq, (b, n, h, d), jnp.float32)
    key = jax.random.normal(kk, (b, n, h, d), jnp.float32)
    # Positive V keeps the reference's divide-by-output-sum normalisation well
    # conditioned (the PyTorch module has the same conditioning caveat).
    value = jax.random.uniform(kv, (b, n, h, d), jnp.float32, minval=0.5, maxval=1.5)

    fwd = jax.jit(dilated_attention,
                  static_argnames=("segment_lengths", "dilation_rates"))
    out = jax.block_until_ready(
        fwd(query, key, value, segment_lengths=segment_lengths,
            dilation_rates=dilation_rates))
    assert out.shape == (b, n, h, d)
    assert bool(jnp.all(jnp.isfinite(out)))

    # End-to-end check against the direct transliteration of the PyTorch forward.
    ref = dilated_attention_reference(query, key, value,
                                      segment_lengths, dilation_rates)
    np.testing.assert_allclose(np.asarray(out), np.asarray(ref),
                               rtol=1e-3, atol=1e-5)

    # Kernel-level check with a forced small row block: multi-step grid plus a
    # ragged last block (exercises the OOB-row masking of the normalisation sums).
    b2, n2, h2, d2 = 2, 256, 4, 128
    q2 = jax.random.normal(jax.random.PRNGKey(1), (b2, n2, h2, d2), jnp.float32)
    k2 = jax.random.normal(jax.random.PRNGKey(2), (b2, n2, h2, d2), jnp.float32)
    v2 = jax.random.uniform(jax.random.PRNGKey(3), (b2, n2, h2, d2), jnp.float32,
                            minval=0.5, maxval=1.5)
    xp, sp = _dilated_group_attention_pallas(q2, k2, v2, n_seg=1, s_sel=64, r=4,
                                             offset=1, hmin=2, g=2, block_rows=24)
    xr, sr = _dilated_group_attention_xla(q2, k2, v2, n_seg=1, s=256, r=4,
                                          offset=1, hmin=2, hmax=4)
    np.testing.assert_allclose(np.asarray(xp), np.asarray(xr), rtol=1e-4, atol=1e-4)
    np.testing.assert_allclose(np.asarray(sp), np.asarray(sr), rtol=1e-4, atol=1e-3)

    # End-to-end bf16 I/O (kept bf16 through HBM; math upcast to f32 in-kernel).
    seg2, dil2 = (64, 256), (2, 4)
    q2b, k2b, v2b = q2.astype(jnp.bfloat16), k2.astype(jnp.bfloat16), v2.astype(jnp.bfloat16)
    out2 = jax.block_until_ready(
        fwd(q2b, k2b, v2b, segment_lengths=seg2, dilation_rates=dil2))
    ref2 = dilated_attention_reference(q2b.astype(jnp.float32),
                                       k2b.astype(jnp.float32),
                                       v2b.astype(jnp.float32), seg2, dil2)
    np.testing.assert_allclose(np.asarray(out2, dtype=np.float32), np.asarray(ref2),
                               rtol=2e-2, atol=2e-2)

    print("KERNEL_OK")
</pallas_src>

<mosaic_0001>
module attributes {stable_mosaic.version = 11 : i64} {
  func.func @kernel(%arg0: i32, %arg1: i32, %arg2: memref<1x4x256xf32, #tpu.memory_space<vmem>>, %arg3: memref<1x4x256xf32, #tpu.memory_space<vmem>>, %arg4: memref<1x4x256xf32, #tpu.memory_space<vmem>>, %arg5: memref<1x4x256xf32, #tpu.memory_space<vmem>>, %arg6: memref<1x1x256xf32, #tpu.memory_space<vmem>>) attributes {dimension_semantics = [#tpu.dimension_semantics<parallel>, #tpu.dimension_semantics<parallel>], iteration_bounds = array<i64: 2, 1>, scalar_prefetch = 0 : i64, scratch_operands = 0 : i64, tpu.core_type = #tpu.core_type<tc>, window_params = [{transform_indices = @transform_0, window_bounds = array<i64: 1, 4, 256>}, {transform_indices = @transform_1, window_bounds = array<i64: 1, 4, 256>}, {transform_indices = @transform_2, window_bounds = array<i64: 1, 4, 256>}, {transform_indices = @transform_3, window_bounds = array<i64: 1, 4, 256>}, {transform_indices = @transform_4, window_bounds = array<i64: 1, 1, 256>}]} {
    %c4_i32 = arith.constant 4 : i32
    %0 = arith.muli %arg1, %c4_i32 : i32
    %1 = tpu.iota {dimensions = array<i32: 0>} : vector<4x1xi32>
    %2 = vector.broadcast %0 : i32 to vector<4x1xi32>
    %3 = arith.addi %2, %1 : vector<4x1xi32>
    %c4_i32_0 = arith.constant 4 : i32
    %4 = vector.broadcast %c4_i32_0 : i32 to vector<4x1xi32>
    %5 = arith.cmpi slt, %3, %4 : vector<4x1xi32>
    %c0 = arith.constant 0 : index
    %c0_1 = arith.constant 0 : index
    %c0_2 = arith.constant 0 : index
    %6 = vector.load %arg2[%c0, %c0_1, %c0_2] : memref<1x4x256xf32, #tpu.memory_space<vmem>>, vector<1x4x128xf32>
    %7 = vector.shape_cast %6 : vector<1x4x128xf32> to vector<4x128xf32>
    %c0_3 = arith.constant 0 : index
    %c0_4 = arith.constant 0 : index
    %c0_5 = arith.constant 0 : index
    %8 = vector.load %arg3[%c0_3, %c0_4, %c0_5] : memref<1x4x256xf32, #tpu.memory_space<vmem>>, vector<1x4x128xf32>
    %9 = vector.shape_cast %8 : vector<1x4x128xf32> to vector<4x128xf32>
    %10 = arith.mulf %7, %9 : vector<4x128xf32>
    %cst = arith.constant dense<0.000000e+00> : vector<4xf32>
    %11 = vector.multi_reduction <add>, %10, %cst [1] : vector<4x128xf32> to vector<4xf32>
    %12 = vector.shape_cast %11 : vector<4xf32> to vector<4x1xf32>
    %cst_6 = arith.constant 0.0883883461 : f32
    %13 = vector.broadcast %cst_6 : f32 to vector<4x1xf32>
    %14 = arith.mulf %12, %13 : vector<4x1xf32>
    %c0_7 = arith.constant 0 : index
    %c0_8 = arith.constant 0 : index
    %c128 = arith.constant 128 : index
    %15 = vector.load %arg3[%c0_7, %c0_8, %c128] : memref<1x4x256xf32, #tpu.memory_space<vmem>>, vector<1x4x128xf32>
    %16 = vector.shape_cast %15 : vector<1x4x128xf32> to vector<4x128xf32>
    %17 = arith.mulf %7, %16 : vector<4x128xf32>
    %cst_9 = arith.constant dense<0.000000e+00> : vector<4xf32>
    %18 = vector.multi_reduction <add>, %17, %cst_9 [1] : vector<4x128xf32> to vector<4xf32>
    %19 = vector.shape_cast %18 : vector<4xf32> to vector<4x1xf32>
    %cst_10 = arith.constant 0.0883883461 : f32
    %20 = vector.broadcast %cst_10 : f32 to vector<4x1xf32>
    %21 = arith.mulf %19, %20 : vector<4x1xf32>
    %22 = arith.maximumf %14, %21 : vector<4x1xf32>
    %23 = arith.subf %14, %22 : vector<4x1xf32>
    %24 = math.exp %23 : vector<4x1xf32>
    %25 = arith.subf %21, %22 : vector<4x1xf32>
    %26 = math.exp %25 : vector<4x1xf32>
    %27 = arith.addf %24, %26 : vector<4x1xf32>
    %28 = tpu.reciprocal %27 : vector<4x1xf32> -> vector<4x1xf32>
    %c0_11 = arith.constant 0 : index
    %c0_12 = arith.constant 0 : index
    %c0_13 = arith.constant 0 : index
    %29 = vector.load %arg4[%c0_11, %c0_12, %c0_13] : memref<1x4x256xf32, #tpu.memory_space<vmem>>, vector<1x4x128xf32>
    %30 = vector.shape_cast %29 : vector<1x4x128xf32> to vector<4x128xf32>
    %31 = vector.broadcast %24 : vector<4x1xf32> to vector<4x128xf32>
    %32 = arith.mulf %31, %30 : vector<4x128xf32>
    %c0_14 = arith.constant 0 : index
    %c0_15 = arith.constant 0 : index
    %c128_16 = arith.constant 128 : index
    %33 = vector.load %arg4[%c0_14, %c0_15, %c128_16] : memref<1x4x256xf32, #tpu.memory_space<vmem>>, vector<1x4x128xf32>
    %34 = vector.shape_cast %33 : vector<1x4x128xf32> to vector<4x128xf32>
    %35 = vector.broadcast %26 : vector<4x1xf32> to vector<4x128xf32>
    %36 = arith.mulf %35, %34 : vector<4x128xf32>
    %37 = arith.addf %32, %36 : vector<4x128xf32>
    %38 = vector.broadcast %28 : vector<4x1xf32> to vector<4x128xf32>
    %39 = arith.mulf %37, %38 : vector<4x128xf32>
    %c0_17 = arith.constant 0 : index
    %c0_18 = arith.constant 0 : index
    %c0_19 = arith.constant 0 : index
    %40 = vector.load %arg5[%c0_17, %c0_18, %c0_19] : memref<1x4x256xf32, #tpu.memory_space<vmem>>, vector<1x4x128xf32>
    %41 = vector.shape_cast %40 : vector<1x4x128xf32> to vector<4x128xf32>
    %42 = vector.shape_cast %39 : vector<4x128xf32> to vector<1x4x128xf32>
    tpu.vector_store %arg5[%c0_17, %c0_18, %c0_19], %42 {strides = array<i32>} : memref<1x4x256xf32, #tpu.memory_space<vmem>>, vector<1x4x128xf32>,
    %cst_20 = arith.constant 0.000000e+00 : f32
    %43 = vector.shape_cast %5 : vector<4x1xi1> to vector<4x1xi1>
    %44 = vector.broadcast %43 : vector<4x1xi1> to vector<4x128xi1>
    %45 = vector.broadcast %cst_20 : f32 to vector<4x128xf32>
    %46 = arith.select %44, %39, %45 : vector<4x128xi1>, vector<4x128xf32>
    %cst_21 = arith.constant dense<0.000000e+00> : vector<128xf32>
    %47 = vector.multi_reduction <add>, %46, %cst_21 [0] : vector<4x128xf32> to vector<128xf32>
    %48 = vector.shape_cast %47 : vector<128xf32> to vector<1x128xf32>
    %c0_22 = arith.constant 0 : index
    %c0_23 = arith.constant 0 : index
    %c0_24 = arith.constant 0 : index
    %49 = vector.load %arg6[%c0_22, %c0_23, %c0_24] : memref<1x1x256xf32, #tpu.memory_space<vmem>>, vector<1x1x128xf32>
    %50 = vector.shape_cast %49 : vector<1x1x128xf32> to vector<1x128xf32>
    %51 = vector.shape_cast %48 : vector<1x128xf32> to vector<1x1x128xf32>
    tpu.vector_store %arg6[%c0_22, %c0_23, %c0_24], %51 {strides = array<i32>} : memref<1x1x256xf32, #tpu.memory_space<vmem>>, vector<1x1x128xf32>,
    %c0_25 = arith.constant 0 : index
    %c0_26 = arith.constant 0 : index
    %c128_27 = arith.constant 128 : index
    %52 = vector.load %arg2[%c0_25, %c0_26, %c128_27] : memref<1x4x256xf32, #tpu.memory_space<vmem>>, vector<1x4x128xf32>
    %53 = vector.shape_cast %52 : vector<1x4x128xf32> to vector<4x128xf32>
    %c0_28 = arith.constant 0 : index
    %c0_29 = arith.constant 0 : index
    %c0_30 = arith.constant 0 : index
    %54 = vector.load %arg3[%c0_28, %c0_29, %c0_30] : memref<1x4x256xf32, #tpu.memory_space<vmem>>, vector<1x4x128xf32>
    %55 = vector.shape_cast %54 : vector<1x4x128xf32> to vector<4x128xf32>
    %56 = arith.mulf %53, %55 : vector<4x128xf32>
    %cst_31 = arith.constant dense<0.000000e+00> : vector<4xf32>
    %57 = vector.multi_reduction <add>, %56, %cst_31 [1] : vector<4x128xf32> to vector<4xf32>
    %58 = vector.shape_cast %57 : vector<4xf32> to vector<4x1xf32>
    %cst_32 = arith.constant 0.0883883461 : f32
    %59 = vector.broadcast %cst_32 : f32 to vector<4x1xf32>
    %60 = arith.mulf %58, %59 : vector<4x1xf32>
    %c0_33 = arith.constant 0 : index
    %c0_34 = arith.constant 0 : index
    %c128_35 = arith.constant 128 : index
    %61 = vector.load %arg3[%c0_33, %c0_34, %c128_35] : memref<1x4x256xf32, #tpu.memory_space<vmem>>, vector<1x4x128xf32>
    %62 = vector.shape_cast %61 : vector<1x4x128xf32> to vector<4x128xf32>
    %63 = arith.mulf %53, %62 : vector<4x128xf32>
    %cst_36 = arith.constant dense<0.000000e+00> : vector<4xf32>
    %64 = vector.multi_reduction <add>, %63, %cst_36 [1] : vector<4x128xf32> to vector<4xf32>
    %65 = vector.shape_cast %64 : vector<4xf32> to vector<4x1xf32>
    %cst_37 = arith.constant 0.0883883461 : f32
    %66 = vector.broadcast %cst_37 : f32 to vector<4x1xf32>
    %67 = arith.mulf %65, %66 : vector<4x1xf32>
    %68 = arith.maximumf %60, %67 : vector<4x1xf32>
    %69 = arith.subf %60, %68 : vector<4x1xf32>
    %70 = math.exp %69 : vector<4x1xf32>
    %71 = arith.subf %67, %68 : vector<4x1xf32>
    %72 = math.exp %71 : vector<4x1xf32>
    %73 = arith.addf %70, %72 : vector<4x1xf32>
    %74 = tpu.reciprocal %73 : vector<4x1xf32> -> vector<4x1xf32>
    %c0_38 = arith.constant 0 : index
    %c0_39 = arith.constant 0 : index
    %c0_40 = arith.constant 0 : index
    %75 = vector.load %arg4[%c0_38, %c0_39, %c0_40] : memref<1x4x256xf32, #tpu.memory_space<vmem>>, vector<1x4x128xf32>
    %76 = vector.shape_cast %75 : vector<1x4x128xf32> to vector<4x128xf32>
    %77 = vector.broadcast %70 : vector<4x1xf32> to vector<4x128xf32>
    %78 = arith.mulf %77, %76 : vector<4x128xf32>
    %c0_41 = arith.constant 0 : index
    %c0_42 = arith.constant 0 : index
    %c128_43 = arith.constant 128 : index
    %79 = vector.load %arg4[%c0_41, %c0_42, %c128_43] : memref<1x4x256xf32, #tpu.memory_space<vmem>>, vector<1x4x128xf32>
    %80 = vector.shape_cast %79 : vector<1x4x128xf32> to vector<4x128xf32>
    %81 = vector.broadcast %72 : vector<4x1xf32> to vector<4x128xf32>
    %82 = arith.mulf %81, %80 : vector<4x128xf32>
    %83 = arith.addf %78, %82 : vector<4x128xf32>
    %84 = vector.broadcast %74 : vector<4x1xf32> to vector<4x128xf32>
    %85 = arith.mulf %83, %84 : vector<4x128xf32>
    %c0_44 = arith.constant 0 : index
    %c0_45 = arith.constant 0 : index
    %c128_46 = arith.constant 128 : index
    %86 = vector.load %arg5[%c0_44, %c0_45, %c128_46] : memref<1x4x256xf32, #tpu.memory_space<vmem>>, vector<1x4x128xf32>
    %87 = vector.shape_cast %86 : vector<1x4x128xf32> to vector<4x128xf32>
    %88 = vector.shape_cast %85 : vector<4x128xf32> to vector<1x4x128xf32>
    tpu.vector_store %arg5[%c0_44, %c0_45, %c128_46], %88 {strides = array<i32>} : memref<1x4x256xf32, #tpu.memory_space<vmem>>, vector<1x4x128xf32>,
    %cst_47 = arith.constant 0.000000e+00 : f32
    %89 = vector.shape_cast %5 : vector<4x1xi1> to vector<4x1xi1>
    %90 = vector.broadcast %89 : vector<4x1xi1> to vector<4x128xi1>
    %91 = vector.broadcast %cst_47 : f32 to vector<4x128xf32>
    %92 = arith.select %90, %85, %91 : vector<4x128xi1>, vector<4x128xf32>
    %cst_48 = arith.constant dense<0.000000e+00> : vector<128xf32>
    %93 = vector.multi_reduction <add>, %92, %cst_48 [0] : vector<4x128xf32> to vector<128xf32>
    %94 = vector.shape_cast %93 : vector<128xf32> to vector<1x128xf32>
    %c0_49 = arith.constant 0 : index
    %c0_50 = arith.constant 0 : index
    %c128_51 = arith.constant 128 : index
    %95 = vector.load %arg6[%c0_49, %c0_50, %c128_51] : memref<1x1x256xf32, #tpu.memory_space<vmem>>, vector<1x1x128xf32>
    %96 = vector.shape_cast %95 : vector<1x1x128xf32> to vector<1x128xf32>
    %97 = vector.shape_cast %94 : vector<1x128xf32> to vector<1x1x128xf32>
    tpu.vector_store %arg6[%c0_49, %c0_50, %c128_51], %97 {strides = array<i32>} : memref<1x1x256xf32, #tpu.memory_space<vmem>>, vector<1x1x128xf32>,
    return
  }
  func.func @transform_0(%arg0: i32, %arg1: i32) -> (i32, i32, i32) {
    %c3_i32 = arith.constant 3 : i32
    %c0_i32 = arith.constant 0 : i32
    return %arg0, %arg1, %c3_i32 : i32, i32, i32
  }
  func.func @transform_1(%arg0: i32, %arg1: i32) -> (i32, i32, i32) {
    %c3_i32 = arith.constant 3 : i32
    %c0_i32 = arith.constant 0 : i32
    return %arg0, %arg1, %c3_i32 : i32, i32, i32
  }
  func.func @transform_2(%arg0: i32, %arg1: i32) -> (i32, i32, i32) {
    %c3_i32 = arith.constant 3 : i32
    %c0_i32 = arith.constant 0 : i32
    return %arg0, %arg1, %c3_i32 : i32, i32, i32
  }
  func.func @transform_3(%arg0: i32, %arg1: i32) -> (i32, i32, i32) {
    %c0_i32 = arith.constant 0 : i32
    %c0_i32_0 = arith.constant 0 : i32
    return %arg0, %arg1, %c0_i32 : i32, i32, i32
  }
  func.func @transform_4(%arg0: i32, %arg1: i32) -> (i32, i32, i32) {
    %c0_i32 = arith.constant 0 : i32
    %c0_i32_0 = arith.constant 0 : i32
    return %arg0, %arg1, %c0_i32 : i32, i32, i32
  }
}

module attributes {stable_mosaic.version = 11 : i64} {
  func.func @kernel(%arg0: i32, %arg1: i32, %arg2: memref<1x4x256xf32, #tpu.memory_space<vmem>>, %arg3: memref<1x4x256xf32, #tpu.memory_space<vmem>>, %arg4: memref<1x4x256xf32, #tpu.memory_space<vmem>>, %arg5: memref<1x4x256xf32, #tpu.memory_space<vmem>>, %arg6: memref<1x1x256xf32, #tpu.memory_space<vmem>>) attributes {dimension_semantics = [#tpu.dimension_semantics<parallel>, #tpu.dimension_semantics<parallel>], iteration_bounds = array<i64: 4, 1>, scalar_prefetch = 0 : i64, scratch_operands = 0 : i64, tpu.core_type = #tpu.core_type<tc>, window_params = [{transform_indices = @transform_0, window_bounds = array<i64: 1, 4, 256>}, {transform_indices = @transform_1, window_bounds = array<i64: 1, 4, 256>}, {transform_indices = @transform_2, window_bounds = array<i64: 1, 4, 256>}, {transform_indices = @transform_3, window_bounds = array<i64: 1, 4, 256>}, {transform_indices = @transform_4, window_bounds = array<i64: 1, 1, 256>}]} {
    %c4_i32 = arith.constant 4 : i32
    %0 = arith.muli %arg1, %c4_i32 : i32
    %1 = tpu.iota {dimensions = array<i32: 0>} : vector<4x1xi32>
    %2 = vector.broadcast %0 : i32 to vector<4x1xi32>
    %3 = arith.addi %2, %1 : vector<4x1xi32>
    %c4_i32_0 = arith.constant 4 : i32
    %4 = vector.broadcast %c4_i32_0 : i32 to vector<4x1xi32>
    %5 = arith.cmpi slt, %3, %4 : vector<4x1xi32>
    %c0 = arith.constant 0 : index
    %c0_1 = arith.constant 0 : index
    %c0_2 = arith.constant 0 : index
    %6 = vector.load %arg2[%c0, %c0_1, %c0_2] : memref<1x4x256xf32, #tpu.memory_space<vmem>>, vector<1x4x128xf32>
    %7 = vector.shape_cast %6 : vector<1x4x128xf32> to vector<4x128xf32>
    %c0_3 = arith.constant 0 : index
    %c0_4 = arith.constant 0 : index
    %c0_5 = arith.constant 0 : index
    %8 = vector.load %arg3[%c0_3, %c0_4, %c0_5] : memref<1x4x256xf32, #tpu.memory_space<vmem>>, vector<1x4x128xf32>
    %9 = vector.shape_cast %8 : vector<1x4x128xf32> to vector<4x128xf32>
    %10 = arith.mulf %7, %9 : vector<4x128xf32>
    %cst = arith.constant dense<0.000000e+00> : vector<4xf32>
    %11 = vector.multi_reduction <add>, %10, %cst [1] : vector<4x128xf32> to vector<4xf32>
    %12 = vector.shape_cast %11 : vector<4xf32> to vector<4x1xf32>
    %cst_6 = arith.constant 0.0883883461 : f32
    %13 = vector.broadcast %cst_6 : f32 to vector<4x1xf32>
    %14 = arith.mulf %12, %13 : vector<4x1xf32>
    %c0_7 = arith.constant 0 : index
    %c0_8 = arith.constant 0 : index
    %c128 = arith.constant 128 : index
    %15 = vector.load %arg3[%c0_7, %c0_8, %c128] : memref<1x4x256xf32, #tpu.memory_space<vmem>>, vector<1x4x128xf32>
    %16 = vector.shape_cast %15 : vector<1x4x128xf32> to vector<4x128xf32>
    %17 = arith.mulf %7, %16 : vector<4x128xf32>
    %cst_9 = arith.constant dense<0.000000e+00> : vector<4xf32>
    %18 = vector.multi_reduction <add>, %17, %cst_9 [1] : vector<4x128xf32> to vector<4xf32>
    %19 = vector.shape_cast %18 : vector<4xf32> to vector<4x1xf32>
    %cst_10 = arith.constant 0.0883883461 : f32
    %20 = vector.broadcast %cst_10 : f32 to vector<4x1xf32>
    %21 = arith.mulf %19, %20 : vector<4x1xf32>
    %22 = arith.maximumf %14, %21 : vector<4x1xf32>
    %23 = arith.subf %14, %22 : vector<4x1xf32>
    %24 = math.exp %23 : vector<4x1xf32>
    %25 = arith.subf %21, %22 : vector<4x1xf32>
    %26 = math.exp %25 : vector<4x1xf32>
    %27 = arith.addf %24, %26 : vector<4x1xf32>
    %28 = tpu.reciprocal %27 : vector<4x1xf32> -> vector<4x1xf32>
    %c0_11 = arith.constant 0 : index
    %c0_12 = arith.constant 0 : index
    %c0_13 = arith.constant 0 : index
    %29 = vector.load %arg4[%c0_11, %c0_12, %c0_13] : memref<1x4x256xf32, #tpu.memory_space<vmem>>, vector<1x4x128xf32>
    %30 = vector.shape_cast %29 : vector<1x4x128xf32> to vector<4x128xf32>
    %31 = vector.broadcast %24 : vector<4x1xf32> to vector<4x128xf32>
    %32 = arith.mulf %31, %30 : vector<4x128xf32>
    %c0_14 = arith.constant 0 : index
    %c0_15 = arith.constant 0 : index
    %c128_16 = arith.constant 128 : index
    %33 = vector.load %arg4[%c0_14, %c0_15, %c128_16] : memref<1x4x256xf32, #tpu.memory_space<vmem>>, vector<1x4x128xf32>
    %34 = vector.shape_cast %33 : vector<1x4x128xf32> to vector<4x128xf32>
    %35 = vector.broadcast %26 : vector<4x1xf32> to vector<4x128xf32>
    %36 = arith.mulf %35, %34 : vector<4x128xf32>
    %37 = arith.addf %32, %36 : vector<4x128xf32>
    %38 = vector.broadcast %28 : vector<4x1xf32> to vector<4x128xf32>
    %39 = arith.mulf %37, %38 : vector<4x128xf32>
    %c0_17 = arith.constant 0 : index
    %c0_18 = arith.constant 0 : index
    %c0_19 = arith.constant 0 : index
    %40 = vector.load %arg5[%c0_17, %c0_18, %c0_19] : memref<1x4x256xf32, #tpu.memory_space<vmem>>, vector<1x4x128xf32>
    %41 = vector.shape_cast %40 : vector<1x4x128xf32> to vector<4x128xf32>
    %42 = vector.shape_cast %39 : vector<4x128xf32> to vector<1x4x128xf32>
    tpu.vector_store %arg5[%c0_17, %c0_18, %c0_19], %42 {strides = array<i32>} : memref<1x4x256xf32, #tpu.memory_space<vmem>>, vector<1x4x128xf32>,
    %cst_20 = arith.constant 0.000000e+00 : f32
    %43 = vector.shape_cast %5 : vector<4x1xi1> to vector<4x1xi1>
    %44 = vector.broadcast %43 : vector<4x1xi1> to vector<4x128xi1>
    %45 = vector.broadcast %cst_20 : f32 to vector<4x128xf32>
    %46 = arith.select %44, %39, %45 : vector<4x128xi1>, vector<4x128xf32>
    %cst_21 = arith.constant dense<0.000000e+00> : vector<128xf32>
    %47 = vector.multi_reduction <add>, %46, %cst_21 [0] : vector<4x128xf32> to vector<128xf32>
    %48 = vector.shape_cast %47 : vector<128xf32> to vector<1x128xf32>
    %c0_22 = arith.constant 0 : index
    %c0_23 = arith.constant 0 : index
    %c0_24 = arith.constant 0 : index
    %49 = vector.load %arg6[%c0_22, %c0_23, %c0_24] : memref<1x1x256xf32, #tpu.memory_space<vmem>>, vector<1x1x128xf32>
    %50 = vector.shape_cast %49 : vector<1x1x128xf32> to vector<1x128xf32>
    %51 = vector.shape_cast %48 : vector<1x128xf32> to vector<1x1x128xf32>
    tpu.vector_store %arg6[%c0_22, %c0_23, %c0_24], %51 {strides = array<i32>} : memref<1x1x256xf32, #tpu.memory_space<vmem>>, vector<1x1x128xf32>,
    %c0_25 = arith.constant 0 : index
    %c0_26 = arith.constant 0 : index
    %c128_27 = arith.constant 128 : index
    %52 = vector.load %arg2[%c0_25, %c0_26, %c128_27] : memref<1x4x256xf32, #tpu.memory_space<vmem>>, vector<1x4x128xf32>
    %53 = vector.shape_cast %52 : vector<1x4x128xf32> to vector<4x128xf32>
    %c0_28 = arith.constant 0 : index
    %c0_29 = arith.constant 0 : index
    %c0_30 = arith.constant 0 : index
    %54 = vector.load %arg3[%c0_28, %c0_29, %c0_30] : memref<1x4x256xf32, #tpu.memory_space<vmem>>, vector<1x4x128xf32>
    %55 = vector.shape_cast %54 : vector<1x4x128xf32> to vector<4x128xf32>
    %56 = arith.mulf %53, %55 : vector<4x128xf32>
    %cst_31 = arith.constant dense<0.000000e+00> : vector<4xf32>
    %57 = vector.multi_reduction <add>, %56, %cst_31 [1] : vector<4x128xf32> to vector<4xf32>
    %58 = vector.shape_cast %57 : vector<4xf32> to vector<4x1xf32>
    %cst_32 = arith.constant 0.0883883461 : f32
    %59 = vector.broadcast %cst_32 : f32 to vector<4x1xf32>
    %60 = arith.mulf %58, %59 : vector<4x1xf32>
    %c0_33 = arith.constant 0 : index
    %c0_34 = arith.constant 0 : index
    %c128_35 = arith.constant 128 : index
    %61 = vector.load %arg3[%c0_33, %c0_34, %c128_35] : memref<1x4x256xf32, #tpu.memory_space<vmem>>, vector<1x4x128xf32>
    %62 = vector.shape_cast %61 : vector<1x4x128xf32> to vector<4x128xf32>
    %63 = arith.mulf %53, %62 : vector<4x128xf32>
    %cst_36 = arith.constant dense<0.000000e+00> : vector<4xf32>
    %64 = vector.multi_reduction <add>, %63, %cst_36 [1] : vector<4x128xf32> to vector<4xf32>
    %65 = vector.shape_cast %64 : vector<4xf32> to vector<4x1xf32>
    %cst_37 = arith.constant 0.0883883461 : f32
    %66 = vector.broadcast %cst_37 : f32 to vector<4x1xf32>
    %67 = arith.mulf %65, %66 : vector<4x1xf32>
    %68 = arith.maximumf %60, %67 : vector<4x1xf32>
    %69 = arith.subf %60, %68 : vector<4x1xf32>
    %70 = math.exp %69 : vector<4x1xf32>
    %71 = arith.subf %67, %68 : vector<4x1xf32>
    %72 = math.exp %71 : vector<4x1xf32>
    %73 = arith.addf %70, %72 : vector<4x1xf32>
    %74 = tpu.reciprocal %73 : vector<4x1xf32> -> vector<4x1xf32>
    %c0_38 = arith.constant 0 : index
    %c0_39 = arith.constant 0 : index
    %c0_40 = arith.constant 0 : index
    %75 = vector.load %arg4[%c0_38, %c0_39, %c0_40] : memref<1x4x256xf32, #tpu.memory_space<vmem>>, vector<1x4x128xf32>
    %76 = vector.shape_cast %75 : vector<1x4x128xf32> to vector<4x128xf32>
    %77 = vector.broadcast %70 : vector<4x1xf32> to vector<4x128xf32>
    %78 = arith.mulf %77, %76 : vector<4x128xf32>
    %c0_41 = arith.constant 0 : index
    %c0_42 = arith.constant 0 : index
    %c128_43 = arith.constant 128 : index
    %79 = vector.load %arg4[%c0_41, %c0_42, %c128_43] : memref<1x4x256xf32, #tpu.memory_space<vmem>>, vector<1x4x128xf32>
    %80 = vector.shape_cast %79 : vector<1x4x128xf32> to vector<4x128xf32>
    %81 = vector.broadcast %72 : vector<4x1xf32> to vector<4x128xf32>
    %82 = arith.mulf %81, %80 : vector<4x128xf32>
    %83 = arith.addf %78, %82 : vector<4x128xf32>
    %84 = vector.broadcast %74 : vector<4x1xf32> to vector<4x128xf32>
    %85 = arith.mulf %83, %84 : vector<4x128xf32>
    %c0_44 = arith.constant 0 : index
    %c0_45 = arith.constant 0 : index
    %c128_46 = arith.constant 128 : index
    %86 = vector.load %arg5[%c0_44, %c0_45, %c128_46] : memref<1x4x256xf32, #tpu.memory_space<vmem>>, vector<1x4x128xf32>
    %87 = vector.shape_cast %86 : vector<1x4x128xf32> to vector<4x128xf32>
    %88 = vector.shape_cast %85 : vector<4x128xf32> to vector<1x4x128xf32>
    tpu.vector_store %arg5[%c0_44, %c0_45, %c128_46], %88 {strides = array<i32>} : memref<1x4x256xf32, #tpu.memory_space<vmem>>, vector<1x4x128xf32>,
    %cst_47 = arith.constant 0.000000e+00 : f32
    %89 = vector.shape_cast %5 : vector<4x1xi1> to vector<4x1xi1>
    %90 = vector.broadcast %89 : vector<4x1xi1> to vector<4x128xi1>
    %91 = vector.broadcast %cst_47 : f32 to vector<4x128xf32>
    %92 = arith.select %90, %85, %91 : vector<4x128xi1>, vector<4x128xf32>
    %cst_48 = arith.constant dense<0.000000e+00> : vector<128xf32>
    %93 = vector.multi_reduction <add>, %92, %cst_48 [0] : vector<4x128xf32> to vector<128xf32>
    %94 = vector.shape_cast %93 : vector<128xf32> to vector<1x128xf32>
    %c0_49 = arith.constant 0 : index
    %c0_50 = arith.constant 0 : index
    %c128_51 = arith.constant 128 : index
    %95 = vector.load %arg6[%c0_49, %c0_50, %c128_51] : memref<1x1x256xf32, #tpu.memory_space<vmem>>, vector<1x1x128xf32>
    %96 = vector.shape_cast %95 : vector<1x1x128xf32> to vector<1x128xf32>
    %97 = vector.shape_cast %94 : vector<1x128xf32> to vector<1x1x128xf32>
    tpu.vector_store %arg6[%c0_49, %c0_50, %c128_51], %97 {strides = array<i32>} : memref<1x1x256xf32, #tpu.memory_space<vmem>>, vector<1x1x128xf32>,
    return
  }
  func.func @transform_0(%arg0: i32, %arg1: i32) -> (i32, i32, i32) {
    %c0_i32 = arith.constant 0 : i32
    %c0_i32_0 = arith.constant 0 : i32
    return %arg0, %arg1, %c0_i32 : i32, i32, i32
  }
  func.func @transform_1(%arg0: i32, %arg1: i32) -> (i32, i32, i32) {
    %c0_i32 = arith.constant 0 : i32
    %c0_i32_0 = arith.constant 0 : i32
    return %arg0, %arg1, %c0_i32 : i32, i32, i32
  }
  func.func @transform_2(%arg0: i32, %arg1: i32) -> (i32, i32, i32) {
    %c0_i32 = arith.constant 0 : i32
    %c0_i32_0 = arith.constant 0 : i32
    return %arg0, %arg1, %c0_i32 : i32, i32, i32
  }
  func.func @transform_3(%arg0: i32, %arg1: i32) -> (i32, i32, i32) {
    %c0_i32 = arith.constant 0 : i32
    %c0_i32_0 = arith.constant 0 : i32
    return %arg0, %arg1, %c0_i32 : i32, i32, i32
  }
  func.func @transform_4(%arg0: i32, %arg1: i32) -> (i32, i32, i32) {
    %c0_i32 = arith.constant 0 : i32
    %c0_i32_0 = arith.constant 0 : i32
    return %arg0, %arg1, %c0_i32 : i32, i32, i32
  }
}

</mosaic_0001>

<bundles_post_ra>
// kernel: dilated_attention.3
= control target key start
LH: loop header
LB: loop body
LE: loop exit
PB: predicated region body
PF: predicated region fallthrough
CT: control target
= control target key end

     0   :  { %s726_s15 = smov 0   ;;  %s728_s16 = smov 0   ;;  %s784_s0 = inlined_call_operand.vmem [shape: f32[2,4,1024], index: 0, kind: input, shape index: {}]   ;;  %s785_s1 = inlined_call_operand.vmem [shape: f32[2,4,1024], index: 1, kind: input, shape index: {}]   ;;  %s786_s2 = inlined_call_operand.vmem [shape: f32[2,4,1024], index: 2, kind: input, shape index: {}]   ;;  %s787_s3 = inlined_call_operand.vmem [shape: f32[2,4,256], index: 3, kind: output, shape index: {0}]   ;;  %s788_s4 = inlined_call_operand.vmem [shape: f32[2,1,256], index: 4, kind: output, shape index: {1}]  }
   0x1   :  { %s730_s17 = smov 0  }
   0x2 LB: > { %s27_s18 = sadd.s32 1, %s695_s16  ;;  %p615_p0 = scmp.ge.s32.totalorder %s699_s17, 1  ;;  %s699_s17 = sphi %s730_s17, %s15_s17   ;;  %s695_s16 = sphi %s728_s16, %s790_s16   ;;  %s691_s15 = sphi %s726_s15, %s789_s15  }
   0x3   : > { %p29_p1 = scmp.ge.s32.totalorder %s27_s18, 2  ;;  %p222_p2 = scmp.lt.s32.totalorder %s699_s17, 3 }
   0x5   : > { %s792_s18 = smov (%p29_p1, %s27_s18), 0  ;;  %p223_p3 = pnand %p615_p0, %p222_p2 }
   0x6   : > { %p285_p4 = scmp.lt.s32.totalorder (!%p223_p3), %s691_s15, 1  ;;  %vm341_vm0 = vcmask (!%p223_p3), 1043456   ;;  %v333_v40 = vlaneseq (!%p223_p3) }
   0x7   : > { %226 = sbr.rel (%p223_p3) target bundleno = 219 (0xdb), region = 32 }
   0x8   : > { %v334_v45 = vshrl.u32 (!%p223_p3), %v333_v40, 7  ;;  %vm380_vm2 = vcmp.lt.s32.totalorder (!%p223_p3), %v333_v40, 128 }
   0xa   : > { %vm337_vm1 = vcmp.lt.s32.totalorder (!%p223_p3), %v334_v45, 4 }
   0xe   : > { %s794_s15 = smov (!%p285_p4, %s691_s15), 1 }
   0xf   : > { %s747_s19 = sshll.u32 %s794_s15, 5  ;;  %s640_s29 = sshll.u32 %s794_s15, 3 }
  0x10   : > { %s521_s22 = scalar_lea.vmem %s784_s0, %s747_s19  ;;  %s527_s25 = scalar_lea.vmem %s785_s1, %s747_s19 }
  0x11   : > { %v630_v0 = vld [vmem:[%s521_s22 + $0x1c] sm:$0xf]  ;;  %v631_v1 = vld [vmem:[%s527_s25 + $0x18] sm:$0xf]  ;;  %s533_s28 = scalar_lea.vmem %s786_s2, %s747_s19  ;;  %s323_s6 = scalar_lea.vmem %s787_s3, %s640_s29 }
  0x12   : > { %v625_v2 = vld [vmem:[%s521_s22 + $0x18] sm:$0xf]  ;;  %v385_v3 = vmul.f32 %v631_v1, %v630_v0  ;;  %v632_v7 = vld [vmem:[%s527_s25 + $0x1c] sm:$0xf]  ;;  %s624_s7 = sshll.u32 %s794_s15, 1 }
  0x13   : > { %v626_v4 = vld [vmem:[%s527_s25 + $0x18] sm:$0xf]  ;;  %v627_v8 = vld [vmem:[%s527_s25 + $0x1c] sm:$0xf]  ;;  %v391_v9 = vmul.f32 %v632_v7, %v630_v0  ;;  %s331_s10 = scalar_lea.vmem %s788_s4, %s624_s7 }
  0x14   : > { %v386_v5 = vsel %vm341_vm0, %v385_v3, 0.0  ;;  %v340_v6 = vmul.f32 %v626_v4, %v625_v2  ;;  %v347_v10 = vmul.f32 %v627_v8, %v625_v2  ;;  %v633_v38 = vld [vmem:[%s533_s28 + $0x18] sm:$0xf]  ;;  %v634_v39 = vld [vmem:[%s533_s28 + $0x1c] sm:$0xf] }
  0x15   : > { %387 = vadd.xlane.f32.xlu1 %v386_v5  ;;  %v392_v12 = vsel %vm341_vm0, %v391_v9, 0.0  ;;  %v628_v41 = vld [vmem:[%s533_s28 + $0x18] sm:$0xf]  ;;  %v629_v42 = vld [vmem:[%s533_s28 + $0x1c] sm:$0xf] }
  0x16   : > { %v342_v11 = vsel %vm341_vm0, %v340_v6, 0.0  ;;  %v348_v13 = vsel %vm341_vm0, %v347_v10, 0.0 }
  0x17   : > { %343 = vadd.xlane.f32.xlu0 %v342_v11 }
  0x19   : > { %393 = vadd.xlane.f32.xlu1 %v392_v12 }
  0x1b   : > { %349 = vadd.xlane.f32.xlu0 %v348_v13 }
  0xa2   : > { %v388_v14 = vpop.xlane.xlu1 %387 }
  0xa3   : > { %v389_v17 = vmul.f32 0.088388346, %v388_v14 }
  0xa4   : > { %v344_v15 = vpop.xlane.xlu0 %343 }
  0xa5   : > { %v345_v20 = vmul.f32 0.088388346, %v344_v15 }
  0xa6   : > { %v394_v16 = vpop.xlane.xlu1 %393 }
  0xa7   : > { %v395_v18 = vmul.f32 0.088388346, %v394_v16 }
  0xa8   : > { %v350_v19 = vpop.xlane.xlu0 %349 }
  0xa9   : > { %v396_v21 = vmax.f32 %v389_v17, %v395_v18  ;;  %v351_v22 = vmul.f32 0.088388346, %v350_v19 }
  0xab   : > { %v397_v23 = vsub.f32 %v389_v17, %v396_v21  ;;  %v400_v24 = vsub.f32 %v395_v18, %v396_v21  ;;  %v352_v25 = vmax.f32 %v345_v20, %v351_v22 }
  0xad   : > { %v398_v26 = vmul.f32 1.442695, %v397_v23  ;;  %v401_v27 = vmul.f32 1.442695, %v400_v24  ;;  %v353_v28 = vsub.f32 %v345_v20, %v352_v25  ;;  %v356_v29 = vsub.f32 %v351_v22, %v352_v25 }
  0xaf   : > { %665 = vpow2.f32 %v398_v26  ;;  %v354_v30 = vmul.f32 1.442695, %v353_v28  ;;  %v357_v31 = vmul.f32 1.442695, %v356_v29 }
  0xb0   : > { %667 = vpow2.f32 %v401_v27 }
  0xb1   : > { %669 = vpow2.f32 %v354_v30 }
  0xb2   : > { %671 = vpow2.f32 %v357_v31 }
  0xb9   : > { %v666_v32 = vpop.eup %665 }
  0xba   : > { %v668_v33 = vpop.eup %667  ;;  %v406_v43 = vmul.f32 %v666_v32, %v633_v38 }
  0xbb   : > { %v670_v34 = vpop.eup %669  ;;  %v403_v35 = vadd.f32 %v668_v33, %v666_v32  ;;  %v408_v44 = vmul.f32 %v668_v33, %v634_v39 }
  0xbc   : > { %v672_v36 = vpop.eup %671  ;;  %v362_v46 = vmul.f32 %v670_v34, %v628_v41 }
  0xbd   : > { %673 = vrcp.f32 %v403_v35  ;;  %v359_v37 = vadd.f32 %v672_v36, %v670_v34  ;;  %v364_v47 = vmul.f32 %v672_v36, %v629_v42  ;;  %v409_v48 = vadd.f32 %v408_v44, %v406_v43 }
  0xbf   : > { %675 = vrcp.f32 %v359_v37  ;;  %v365_v51 = vadd.f32 %v364_v47, %v362_v46 }
  0xc7   : > { %v674_v49 = vpop.eup %673 }
  0xc8   : > { %v410_v50 = vmul.f32 %v674_v49, %v409_v48 }
  0xc9   : > { %v676_v52 = vpop.eup %675 }
  0xca   : > { %411 = vst [vmem:[%s323_s6 + $0x4] sm:$0xf] %v410_v50  ;;  %v412_v53 = vsel %vm337_vm1, %v410_v50, 0.0  ;;  %v366_v54 = vmul.f32 %v676_v52, %v365_v51 }
  0xcb   : > { %v413_v55 = vsel %vm341_vm0, %v412_v53, 0.0 }
  0xcc   : > { %v414_v56 = vrot.slane %v413_v55, 4  ;;  %367 = vst [vmem:[%s323_s6] sm:$0xf] %v366_v54  ;;  %v370_v57 = vsel %vm337_vm1, %v366_v54, 0.0 }
  0xcd   : > { %v371_v58 = vsel %vm341_vm0, %v370_v57, 0.0 }
  0xce   : > { %v415_v59 = vadd.f32 %v414_v56, %v413_v55  ;;  %v372_v60 = vrot.slane %v371_v58, 4 }
  0xd0   : > { %v416_v61 = vrot.slane %v415_v59, 2  ;;  %v373_v62 = vadd.f32 %v372_v60, %v371_v58 }
  0xd2   : > { %v417_v63 = vadd.f32 %v416_v61, %v415_v59  ;;  %v374_v0 = vrot.slane %v373_v62, 2 }
  0xd4   : > { %v418_v1 = vrot.slane %v417_v63, 1  ;;  %v375_v2 = vadd.f32 %v374_v0, %v373_v62 }
  0xd6   : > { %v419_v3 = vadd.f32 %v418_v1, %v417_v63  ;;  %v376_v4 = vrot.slane %v375_v2, 1 }
  0xd8   : > { %420 = vst.msk [vmem:[%s331_s10 + $0x1] sm:$0x1] %vm380_vm2, %v419_v3  ;;  %v377_v5 = vadd.f32 %v376_v4, %v375_v2 }
  0xda   : > { %382 = vst.msk [vmem:[%s331_s10] sm:$0x1] %vm380_vm2, %v377_v5 }
  0xdb PF: > { %s15_s17 = sadd.s32 1, %s699_s17   ;;  %s789_s15 = smov %s695_s16 }
  0xdc   : > { %p12_p5 = scmp.ge.s32.totalorder %s15_s17, 4   ;;  %s790_s16 = smov %s792_s18 }
  0xde   :  { %14 = sbr.rel (!%p12_p5) target bundleno = 2 (0x2), region = 80 }

// kernel: dilated_attention.2
= control target key start
LH: loop header
LB: loop body
LE: loop exit
PB: predicated region body
PF: predicated region fallthrough
CT: control target
= control target key end

     0   :  { %s698_s15 = smov 0   ;;  %s700_s16 = smov 0   ;;  %s756_s0 = inlined_call_operand.vmem [shape: f32[4,4,512], index: 0, kind: input, shape index: {}]   ;;  %s757_s1 = inlined_call_operand.vmem [shape: f32[4,4,512], index: 1, kind: input, shape index: {}]   ;;  %s758_s2 = inlined_call_operand.vmem [shape: f32[4,4,512], index: 2, kind: input, shape index: {}]   ;;  %s759_s3 = inlined_call_operand.vmem [shape: f32[4,4,256], index: 3, kind: output, shape index: {0}]   ;;  %s760_s4 = inlined_call_operand.vmem [shape: f32[4,1,256], index: 4, kind: output, shape index: {1}]  }
   0x1   :  { %s702_s17 = smov 0  }
   0x2 LB: > { %s27_s18 = sadd.s32 1, %s667_s16  ;;  %p597_p0 = scmp.ge.s32.totalorder %s671_s17, 1  ;;  %s671_s17 = sphi %s702_s17, %s15_s17   ;;  %s667_s16 = sphi %s700_s16, %s762_s16   ;;  %s663_s15 = sphi %s698_s15, %s761_s15  }
   0x3   : > { %p29_p1 = scmp.ge.s32.totalorder %s27_s18, 4  ;;  %p219_p2 = scmp.lt.s32.totalorder %s671_s17, 5 }
   0x5   : > { %s764_s18 = smov (%p29_p1, %s27_s18), 0  ;;  %p220_p3 = pnand %p597_p0, %p219_p2 }
   0x6   : > { %p279_p4 = scmp.lt.s32.totalorder (!%p220_p3), %s663_s15, 3  ;;  %vm332_vm0 = vcmask (!%p220_p3), 1043456   ;;  %v324_v40 = vlaneseq (!%p220_p3) }
   0x7   : > { %223 = sbr.rel (%p220_p3) target bundleno = 219 (0xdb), region = 32 }
   0x8   : > { %v325_v45 = vshrl.u32 (!%p220_p3), %v324_v40, 7  ;;  %vm371_vm2 = vcmp.lt.s32.totalorder (!%p220_p3), %v324_v40, 128 }
   0xa   : > { %vm328_vm1 = vcmp.lt.s32.totalorder (!%p220_p3), %v325_v45, 4 }
   0xe   : > { %s766_s15 = smov (!%p279_p4, %s663_s15), 3 }
   0xf   : > { %s719_s19 = sshll.u32 %s766_s15, 4  ;;  %s612_s29 = sshll.u32 %s766_s15, 3 }
  0x10   : > { %s287_s22 = scalar_lea.vmem %s756_s0, %s719_s19  ;;  %s296_s25 = scalar_lea.vmem %s757_s1, %s719_s19 }
  0x11   : > { %v374_v0 = vld [vmem:[%s287_s22 + $0x4] sm:$0xf]  ;;  %v375_v1 = vld [vmem:[%s296_s25] sm:$0xf]  ;;  %s305_s28 = scalar_lea.vmem %s758_s2, %s719_s19  ;;  %s314_s6 = scalar_lea.vmem %s759_s3, %s612_s29 }
  0x12   : > { %v329_v2 = vld [vmem:[%s287_s22] sm:$0xf]  ;;  %v376_v3 = vmul.f32 %v375_v1, %v374_v0  ;;  %v381_v7 = vld [vmem:[%s296_s25 + $0x4] sm:$0xf]  ;;  %s606_s7 = sshll.u32 %s766_s15, 1 }
  0x13   : > { %v330_v4 = vld [vmem:[%s296_s25] sm:$0xf]  ;;  %v337_v8 = vld [vmem:[%s296_s25 + $0x4] sm:$0xf]  ;;  %v382_v9 = vmul.f32 %v381_v7, %v374_v0  ;;  %s322_s10 = scalar_lea.vmem %s760_s4, %s606_s7 }
  0x14   : > { %v377_v5 = vsel %vm332_vm0, %v376_v3, 0.0  ;;  %v331_v6 = vmul.f32 %v330_v4, %v329_v2  ;;  %v338_v10 = vmul.f32 %v337_v8, %v329_v2  ;;  %v396_v38 = vld [vmem:[%s305_s28] sm:$0xf]  ;;  %v398_v39 = vld [vmem:[%s305_s28 + $0x4] sm:$0xf] }
  0x15   : > { %378 = vadd.xlane.f32.xlu1 %v377_v5  ;;  %v383_v12 = vsel %vm332_vm0, %v382_v9, 0.0  ;;  %v352_v41 = vld [vmem:[%s305_s28] sm:$0xf]  ;;  %v354_v42 = vld [vmem:[%s305_s28 + $0x4] sm:$0xf] }
  0x16   : > { %v333_v11 = vsel %vm332_vm0, %v331_v6, 0.0  ;;  %v339_v13 = vsel %vm332_vm0, %v338_v10, 0.0 }
  0x17   : > { %334 = vadd.xlane.f32.xlu0 %v333_v11 }
  0x19   : > { %384 = vadd.xlane.f32.xlu1 %v383_v12 }
  0x1b   : > { %340 = vadd.xlane.f32.xlu0 %v339_v13 }
  0xa2   : > { %v379_v14 = vpop.xlane.xlu1 %378 }
  0xa3   : > { %v380_v17 = vmul.f32 0.088388346, %v379_v14 }
  0xa4   : > { %v335_v15 = vpop.xlane.xlu0 %334 }
  0xa5   : > { %v336_v20 = vmul.f32 0.088388346, %v335_v15 }
  0xa6   : > { %v385_v16 = vpop.xlane.xlu1 %384 }
  0xa7   : > { %v386_v18 = vmul.f32 0.088388346, %v385_v16 }
  0xa8   : > { %v341_v19 = vpop.xlane.xlu0 %340 }
  0xa9   : > { %v387_v21 = vmax.f32 %v380_v17, %v386_v18  ;;  %v342_v22 = vmul.f32 0.088388346, %v341_v19 }
  0xab   : > { %v388_v23 = vsub.f32 %v380_v17, %v387_v21  ;;  %v391_v24 = vsub.f32 %v386_v18, %v387_v21  ;;  %v343_v25 = vmax.f32 %v336_v20, %v342_v22 }
  0xad   : > { %v389_v26 = vmul.f32 1.442695, %v388_v23  ;;  %v392_v27 = vmul.f32 1.442695, %v391_v24  ;;  %v344_v28 = vsub.f32 %v336_v20, %v343_v25  ;;  %v347_v29 = vsub.f32 %v342_v22, %v343_v25 }
  0xaf   : > { %637 = vpow2.f32 %v389_v26  ;;  %v345_v30 = vmul.f32 1.442695, %v344_v28  ;;  %v348_v31 = vmul.f32 1.442695, %v347_v29 }
  0xb0   : > { %639 = vpow2.f32 %v392_v27 }
  0xb1   : > { %641 = vpow2.f32 %v345_v30 }
  0xb2   : > { %643 = vpow2.f32 %v348_v31 }
  0xb9   : > { %v638_v32 = vpop.eup %637 }
  0xba   : > { %v640_v33 = vpop.eup %639  ;;  %v397_v43 = vmul.f32 %v638_v32, %v396_v38 }
  0xbb   : > { %v642_v34 = vpop.eup %641  ;;  %v394_v35 = vadd.f32 %v640_v33, %v638_v32  ;;  %v399_v44 = vmul.f32 %v640_v33, %v398_v39 }
  0xbc   : > { %v644_v36 = vpop.eup %643  ;;  %v353_v46 = vmul.f32 %v642_v34, %v352_v41 }
  0xbd   : > { %645 = vrcp.f32 %v394_v35  ;;  %v350_v37 = vadd.f32 %v644_v36, %v642_v34  ;;  %v355_v47 = vmul.f32 %v644_v36, %v354_v42  ;;  %v400_v48 = vadd.f32 %v399_v44, %v397_v43 }
  0xbf   : > { %647 = vrcp.f32 %v350_v37  ;;  %v356_v51 = vadd.f32 %v355_v47, %v353_v46 }
  0xc7   : > { %v646_v49 = vpop.eup %645 }
  0xc8   : > { %v401_v50 = vmul.f32 %v646_v49, %v400_v48 }
  0xc9   : > { %v648_v52 = vpop.eup %647 }
  0xca   : > { %402 = vst [vmem:[%s314_s6 + $0x4] sm:$0xf] %v401_v50  ;;  %v403_v53 = vsel %vm328_vm1, %v401_v50, 0.0  ;;  %v357_v54 = vmul.f32 %v648_v52, %v356_v51 }
  0xcb   : > { %v404_v55 = vsel %vm332_vm0, %v403_v53, 0.0 }
  0xcc   : > { %v405_v56 = vrot.slane %v404_v55, 4  ;;  %358 = vst [vmem:[%s314_s6] sm:$0xf] %v357_v54  ;;  %v361_v57 = vsel %vm328_vm1, %v357_v54, 0.0 }
  0xcd   : > { %v362_v58 = vsel %vm332_vm0, %v361_v57, 0.0 }
  0xce   : > { %v406_v59 = vadd.f32 %v405_v56, %v404_v55  ;;  %v363_v60 = vrot.slane %v362_v58, 4 }
  0xd0   : > { %v407_v61 = vrot.slane %v406_v59, 2  ;;  %v364_v62 = vadd.f32 %v363_v60, %v362_v58 }
  0xd2   : > { %v408_v63 = vadd.f32 %v407_v61, %v406_v59  ;;  %v365_v0 = vrot.slane %v364_v62, 2 }
  0xd4   : > { %v409_v1 = vrot.slane %v408_v63, 1  ;;  %v366_v2 = vadd.f32 %v365_v0, %v364_v62 }
  0xd6   : > { %v410_v3 = vadd.f32 %v409_v1, %v408_v63  ;;  %v367_v4 = vrot.slane %v366_v2, 1 }
  0xd8   : > { %411 = vst.msk [vmem:[%s322_s10 + $0x1] sm:$0x1] %vm371_vm2, %v410_v3  ;;  %v368_v5 = vadd.f32 %v367_v4, %v366_v2 }
  0xda   : > { %373 = vst.msk [vmem:[%s322_s10] sm:$0x1] %vm371_vm2, %v368_v5 }
  0xdb PF: > { %s15_s17 = sadd.s32 1, %s671_s17   ;;  %s761_s15 = smov %s667_s16 }
  0xdc   : > { %p12_p5 = scmp.ge.s32.totalorder %s15_s17, 6   ;;  %s762_s16 = smov %s764_s18 }
  0xde   :  { %14 = sbr.rel (!%p12_p5) target bundleno = 2 (0x2), region = 80 }

</bundles_post_ra>
